<compile_context>
chip_gen: v6e
topology: v6e:2x2x1
jax: 0.10.0
libtpu: 0.0.40
codegen_flags: <defaults>
</compile_context>

<pallas_src>
import functools
import math

import jax
import jax.numpy as jnp
from jax import lax
from jax.experimental import pallas as pl
from jax.experimental.pallas import tpu as pltpu


def _mha_core(Q, K, V, wfc, bfc, *, n_head, d_att, mxu_dtype, out_dtype):
    """Per-head attention with the output projection folded into the head loop."""
    scale = 1.0 / math.sqrt(d_att)
    acc = None
    for h in range(n_head):                       # n_head is small & static -> unrolled
        sl = slice(h * d_att, (h + 1) * d_att)
        Qh = Q[:, sl] * scale                     # fold scale into the small tensor
        Kh = K[:, sl]
        Vh = V[:, sl]
        # NT contraction (last axes of both operands) -> no explicit transpose.
        s = lax.dot_general(Qh, Kh, (((1,), (1,)), ((), ())),
                            preferred_element_type=jnp.float32)
        m = jnp.max(s, axis=-1, keepdims=True)
        p = jnp.exp(s - m)
        # Approximate reciprocal runs on the otherwise-idle EUP slot.
        attn = p * pl.reciprocal(jnp.sum(p, axis=-1, keepdims=True), approx=True)
        ho = jnp.dot(attn.astype(mxu_dtype), Vh.astype(mxu_dtype),
                     preferred_element_type=jnp.float32)
        # Accumulate this head's contribution to the fc output directly
        # (no lane-axis concat of head outputs).
        contrib = jnp.dot(ho, wfc[sl, :], preferred_element_type=jnp.float32)
        acc = contrib if acc is None else acc + contrib
    return (acc + bfc).astype(out_dtype)


def _self_attn_fused_kernel(x_ref, wqkv_ref, bqkv_ref, wfc_ref, bfc_ref, out_ref,
                            *, n_head, d_att):
    """Self-attention path (q = k = v = x): one fused QKV projection matmul."""
    hd = n_head * d_att
    qkv = jnp.dot(x_ref[...], wqkv_ref[...],
                  preferred_element_type=jnp.float32) + bqkv_ref[...]
    Q = qkv[:, 0 * hd:1 * hd]
    K = qkv[:, 1 * hd:2 * hd]
    V = qkv[:, 2 * hd:3 * hd]
    out_ref[...] = _mha_core(Q, K, V, wfc_ref[...], bfc_ref[...],
                             n_head=n_head, d_att=d_att,
                             mxu_dtype=x_ref.dtype, out_dtype=out_ref.dtype)


def _cross_attn_kernel(q_ref, k_ref, v_ref, wqkv_ref, bqkv_ref, wfc_ref, bfc_ref,
                       out_ref, *, n_head, d_att):
    """General path (distinct q/k/v inputs), matching the PyTorch forward."""
    hd = n_head * d_att
    wqkv = wqkv_ref[...]
    bqkv = bqkv_ref[...]
    Q = jnp.dot(q_ref[...], wqkv[:, 0 * hd:1 * hd],
                preferred_element_type=jnp.float32) + bqkv[:, 0 * hd:1 * hd]
    K = jnp.dot(k_ref[...], wqkv[:, 1 * hd:2 * hd],
                preferred_element_type=jnp.float32) + bqkv[:, 1 * hd:2 * hd]
    V = jnp.dot(v_ref[...], wqkv[:, 2 * hd:3 * hd],
                preferred_element_type=jnp.float32) + bqkv[:, 2 * hd:3 * hd]
    out_ref[...] = _mha_core(Q, K, V, wfc_ref[...], bfc_ref[...],
                             n_head=n_head, d_att=d_att,
                             mxu_dtype=q_ref.dtype, out_dtype=out_ref.dtype)


def self_attention(q, k, v, params, *, n_head, d_att):
    """Pallas forward of SelfAttention. params weights are (in, out)-layout
    (already transposed vs torch Linear); biases are (1, out)."""
    len_q = q.shape[0]
    out_features = params["wfc"].shape[1]

    # Fuse the three projection weights/biases once on the wrapper side.
    wqkv = jnp.concatenate([params["wq"], params["wk"], params["wv"]], axis=1)
    bqkv = jnp.concatenate([params["bq"], params["bk"], params["bv"]], axis=1)

    # Lane-dense output: pad fc weight/bias so stores hit full 128-lane
    # vectors; padding columns are zero and sliced off below.
    out_pad = pl.cdiv(out_features, 128) * 128
    pad = out_pad - out_features
    wfc = jnp.pad(params["wfc"], ((0, 0), (0, pad))) if pad else params["wfc"]
    bfc = jnp.pad(params["bfc"], ((0, 0), (0, pad))) if pad else params["bfc"]

    vmem = pl.BlockSpec(memory_space=pltpu.MemorySpace.VMEM)
    out_shape = jax.ShapeDtypeStruct((len_q, out_pad), q.dtype)

    if (q is k) and (k is v):
        kernel = functools.partial(_self_attn_fused_kernel, n_head=n_head, d_att=d_att)
        out = pl.pallas_call(
            kernel, out_shape=out_shape, in_specs=[vmem] * 5, out_specs=vmem,
        )(q, wqkv, bqkv, wfc, bfc)
    else:
        kernel = functools.partial(_cross_attn_kernel, n_head=n_head, d_att=d_att)
        out = pl.pallas_call(
            kernel, out_shape=out_shape, in_specs=[vmem] * 7, out_specs=vmem,
        )(q, k, v, wqkv, bqkv, wfc, bfc)
    return out[:, :out_features]


def ref_self_attention(q, k, v, p, *, n_head, d_att):
    """Pure-JAX reference mirroring the PyTorch forward (dropout = identity)."""
    len_q, len_k = q.shape[0], k.shape[0]
    Q = (q @ p["wq"] + p["bq"]).reshape(len_q, n_head, d_att).transpose(1, 0, 2)
    K = (k @ p["wk"] + p["bk"]).reshape(len_k, n_head, d_att).transpose(1, 0, 2)
    V = (v @ p["wv"] + p["bv"]).reshape(len_k, n_head, d_att).transpose(1, 0, 2)
    s = jnp.einsum("hqd,hkd->hqk", Q, K) / math.sqrt(d_att)
    attn = jax.nn.softmax(s, axis=-1)
    qv = jnp.einsum("hqk,hkd->hqd", attn, V).transpose(1, 0, 2).reshape(len_q, n_head * d_att)
    return qv @ p["wfc"] + p["bfc"]


if __name__ == "__main__":
    # Small shapes implied by the module's forward: q,k,v : (seq_len, input_features)
    seq_len = 8
    input_features = 16
    attention_features = 8   # d_q = d_k = d_v
    n_head = 4
    output_features = 16

    key = jax.random.PRNGKey(0)
    keys = jax.random.split(key, 12)

    q = jax.random.normal(keys[0], (seq_len, input_features), jnp.float32)
    k = jax.random.normal(keys[1], (seq_len, input_features), jnp.float32)
    v = jax.random.normal(keys[2], (seq_len, input_features), jnp.float32)
    x = jax.random.normal(keys[11], (seq_len, input_features), jnp.float32)

    hd = n_head * attention_features
    sc_in = 1.0 / math.sqrt(input_features)
    sc_hd = 1.0 / math.sqrt(hd)
    params = {
        "wq": jax.random.uniform(keys[3], (input_features, hd), jnp.float32, -sc_in, sc_in),
        "bq": jax.random.uniform(keys[4], (1, hd), jnp.float32, -sc_in, sc_in),
        "wk": jax.random.uniform(keys[5], (input_features, hd), jnp.float32, -sc_in, sc_in),
        "bk": jax.random.uniform(keys[6], (1, hd), jnp.float32, -sc_in, sc_in),
        "wv": jax.random.uniform(keys[7], (input_features, hd), jnp.float32, -sc_in, sc_in),
        "bv": jax.random.uniform(keys[8], (1, hd), jnp.float32, -sc_in, sc_in),
        "wfc": jax.random.uniform(keys[9], (hd, output_features), jnp.float32, -sc_hd, sc_hd),
        "bfc": jax.random.uniform(keys[10], (1, output_features), jnp.float32, -sc_hd, sc_hd),
    }

    # Self-attention usage (q = k = v), the DATF call pattern -> fused QKV path.
    out_self = self_attention(x, x, x, params, n_head=n_head, d_att=attention_features)
    out_self = jax.block_until_ready(out_self)
    ref_self = ref_self_attention(x, x, x, params, n_head=n_head, d_att=attention_features)

    # General path with distinct q / k / v.
    out_gen = self_attention(q, k, v, params, n_head=n_head, d_att=attention_features)
    out_gen = jax.block_until_ready(out_gen)
    ref_gen = ref_self_attention(q, k, v, params, n_head=n_head, d_att=attention_features)

    assert out_self.shape == (seq_len, output_features)
    assert out_gen.shape == (seq_len, output_features)
    # Tolerance accounts for the EUP approximate reciprocal in the softmax
    # denominator (~1e-4 relative); everything else is exact f32.
    assert jnp.allclose(out_self, ref_self, atol=2e-3, rtol=2e-3), "self path mismatch"
    assert jnp.allclose(out_gen, ref_gen, atol=2e-3, rtol=2e-3), "general path mismatch"

    print("KERNEL_OK")
</pallas_src>

<mosaic_0001>
module attributes {stable_mosaic.version = 11 : i64} {
  func.func @_self_attn_fused_kernel(%arg0: memref<8x16xf32, #tpu.memory_space<vmem>>, %arg1: memref<16x96xf32, #tpu.memory_space<vmem>>, %arg2: memref<1x96xf32, #tpu.memory_space<vmem>>, %arg3: memref<32x128xf32, #tpu.memory_space<vmem>>, %arg4: memref<1x128xf32, #tpu.memory_space<vmem>>, %arg5: memref<8x128xf32, #tpu.memory_space<vmem>>) attributes {dimension_semantics = [], scalar_prefetch = 0 : i64, scratch_operands = 0 : i64, tpu.core_type = #tpu.core_type<tc>} {
    %c0 = arith.constant 0 : index
    %c0_0 = arith.constant 0 : index
    %0 = vector.load %arg0[%c0, %c0_0] : memref<8x16xf32, #tpu.memory_space<vmem>>, vector<8x16xf32>
    %c0_1 = arith.constant 0 : index
    %c0_2 = arith.constant 0 : index
    %1 = vector.load %arg1[%c0_1, %c0_2] : memref<16x96xf32, #tpu.memory_space<vmem>>, vector<16x96xf32>
    %cst = arith.constant dense<0.000000e+00> : vector<8x96xf32>
    %2 = tpu.matmul %0, %1, %cst {dimension_numbers = #tpu.dot_dimension_numbers<[1], [0], [0], [1], [0, 0, 1, 1], [], []>} : vector<8x16xf32>, vector<16x96xf32>, vector<8x96xf32> -> vector<8x96xf32>
    %c0_3 = arith.constant 0 : index
    %c0_4 = arith.constant 0 : index
    %3 = vector.load %arg2[%c0_3, %c0_4] : memref<1x96xf32, #tpu.memory_space<vmem>>, vector<1x96xf32>
    %4 = vector.broadcast %3 : vector<1x96xf32> to vector<8x96xf32>
    %5 = arith.addf %2, %4 : vector<8x96xf32>
    %6 = vector.extract_strided_slice %5 {offsets = [0, 0], sizes = [8, 32], strides = [1, 1]} : vector<8x96xf32> to vector<8x32xf32>
    %7 = vector.extract_strided_slice %5 {offsets = [0, 32], sizes = [8, 32], strides = [1, 1]} : vector<8x96xf32> to vector<8x32xf32>
    %8 = vector.extract_strided_slice %5 {offsets = [0, 64], sizes = [8, 32], strides = [1, 1]} : vector<8x96xf32> to vector<8x32xf32>
    %c0_5 = arith.constant 0 : index
    %c0_6 = arith.constant 0 : index
    %9 = vector.load %arg3[%c0_5, %c0_6] : memref<32x128xf32, #tpu.memory_space<vmem>>, vector<32x128xf32>
    %c0_7 = arith.constant 0 : index
    %c0_8 = arith.constant 0 : index
    %10 = vector.load %arg4[%c0_7, %c0_8] : memref<1x128xf32, #tpu.memory_space<vmem>>, vector<1x128xf32>
    %11 = vector.extract_strided_slice %6 {offsets = [0, 0], sizes = [8, 8], strides = [1, 1]} : vector<8x32xf32> to vector<8x8xf32>
    %cst_9 = arith.constant 0.353553385 : f32
    %12 = vector.broadcast %cst_9 : f32 to vector<8x8xf32>
    %13 = arith.mulf %11, %12 : vector<8x8xf32>
    %14 = vector.extract_strided_slice %7 {offsets = [0, 0], sizes = [8, 8], strides = [1, 1]} : vector<8x32xf32> to vector<8x8xf32>
    %15 = vector.extract_strided_slice %8 {offsets = [0, 0], sizes = [8, 8], strides = [1, 1]} : vector<8x32xf32> to vector<8x8xf32>
    %cst_10 = arith.constant dense<0.000000e+00> : vector<8x8xf32>
    %16 = tpu.matmul %13, %14, %cst_10 {dimension_numbers = #tpu.dot_dimension_numbers<[1], [1], [0], [0], [0, 0, 1, 0], [], []>} : vector<8x8xf32>, vector<8x8xf32>, vector<8x8xf32> -> vector<8x8xf32>
    %cst_11 = arith.constant dense<0xFF800000> : vector<8xf32>
    %17 = vector.multi_reduction <maximumf>, %16, %cst_11 [1] : vector<8x8xf32> to vector<8xf32>
    %18 = vector.shape_cast %17 : vector<8xf32> to vector<8x1xf32>
    %19 = vector.broadcast %18 : vector<8x1xf32> to vector<8x8xf32>
    %20 = arith.subf %16, %19 : vector<8x8xf32>
    %21 = math.exp %20 : vector<8x8xf32>
    %cst_12 = arith.constant dense<0.000000e+00> : vector<8xf32>
    %22 = vector.multi_reduction <add>, %21, %cst_12 [1] : vector<8x8xf32> to vector<8xf32>
    %23 = vector.shape_cast %22 : vector<8xf32> to vector<8x1xf32>
    %24 = tpu.reciprocal %23 {approx = true} : vector<8x1xf32> -> vector<8x1xf32>
    %25 = vector.broadcast %24 : vector<8x1xf32> to vector<8x8xf32>
    %26 = arith.mulf %21, %25 : vector<8x8xf32>
    %cst_13 = arith.constant dense<0.000000e+00> : vector<8x8xf32>
    %27 = tpu.matmul %26, %15, %cst_13 {dimension_numbers = #tpu.dot_dimension_numbers<[1], [0], [0], [1], [0, 0, 1, 1], [], []>} : vector<8x8xf32>, vector<8x8xf32>, vector<8x8xf32> -> vector<8x8xf32>
    %28 = vector.extract_strided_slice %9 {offsets = [0, 0], sizes = [8, 128], strides = [1, 1]} : vector<32x128xf32> to vector<8x128xf32>
    %cst_14 = arith.constant dense<0.000000e+00> : vector<8x128xf32>
    %29 = tpu.matmul %27, %28, %cst_14 {dimension_numbers = #tpu.dot_dimension_numbers<[1], [0], [0], [1], [0, 0, 1, 1], [], []>} : vector<8x8xf32>, vector<8x128xf32>, vector<8x128xf32> -> vector<8x128xf32>
    %30 = vector.extract_strided_slice %6 {offsets = [0, 8], sizes = [8, 8], strides = [1, 1]} : vector<8x32xf32> to vector<8x8xf32>
    %cst_15 = arith.constant 0.353553385 : f32
    %31 = vector.broadcast %cst_15 : f32 to vector<8x8xf32>
    %32 = arith.mulf %30, %31 : vector<8x8xf32>
    %33 = vector.extract_strided_slice %7 {offsets = [0, 8], sizes = [8, 8], strides = [1, 1]} : vector<8x32xf32> to vector<8x8xf32>
    %34 = vector.extract_strided_slice %8 {offsets = [0, 8], sizes = [8, 8], strides = [1, 1]} : vector<8x32xf32> to vector<8x8xf32>
    %cst_16 = arith.constant dense<0.000000e+00> : vector<8x8xf32>
    %35 = tpu.matmul %32, %33, %cst_16 {dimension_numbers = #tpu.dot_dimension_numbers<[1], [1], [0], [0], [0, 0, 1, 0], [], []>} : vector<8x8xf32>, vector<8x8xf32>, vector<8x8xf32> -> vector<8x8xf32>
    %cst_17 = arith.constant dense<0xFF800000> : vector<8xf32>
    %36 = vector.multi_reduction <maximumf>, %35, %cst_17 [1] : vector<8x8xf32> to vector<8xf32>
    %37 = vector.shape_cast %36 : vector<8xf32> to vector<8x1xf32>
    %38 = vector.broadcast %37 : vector<8x1xf32> to vector<8x8xf32>
    %39 = arith.subf %35, %38 : vector<8x8xf32>
    %40 = math.exp %39 : vector<8x8xf32>
    %cst_18 = arith.constant dense<0.000000e+00> : vector<8xf32>
    %41 = vector.multi_reduction <add>, %40, %cst_18 [1] : vector<8x8xf32> to vector<8xf32>
    %42 = vector.shape_cast %41 : vector<8xf32> to vector<8x1xf32>
    %43 = tpu.reciprocal %42 {approx = true} : vector<8x1xf32> -> vector<8x1xf32>
    %44 = vector.broadcast %43 : vector<8x1xf32> to vector<8x8xf32>
    %45 = arith.mulf %40, %44 : vector<8x8xf32>
    %cst_19 = arith.constant dense<0.000000e+00> : vector<8x8xf32>
    %46 = tpu.matmul %45, %34, %cst_19 {dimension_numbers = #tpu.dot_dimension_numbers<[1], [0], [0], [1], [0, 0, 1, 1], [], []>} : vector<8x8xf32>, vector<8x8xf32>, vector<8x8xf32> -> vector<8x8xf32>
    %47 = vector.extract_strided_slice %9 {offsets = [8, 0], sizes = [8, 128], strides = [1, 1]} : vector<32x128xf32> to vector<8x128xf32>
    %cst_20 = arith.constant dense<0.000000e+00> : vector<8x128xf32>
    %48 = tpu.matmul %46, %47, %cst_20 {dimension_numbers = #tpu.dot_dimension_numbers<[1], [0], [0], [1], [0, 0, 1, 1], [], []>} : vector<8x8xf32>, vector<8x128xf32>, vector<8x128xf32> -> vector<8x128xf32>
    %49 = arith.addf %29, %48 : vector<8x128xf32>
    %50 = vector.extract_strided_slice %6 {offsets = [0, 16], sizes = [8, 8], strides = [1, 1]} : vector<8x32xf32> to vector<8x8xf32>
    %cst_21 = arith.constant 0.353553385 : f32
    %51 = vector.broadcast %cst_21 : f32 to vector<8x8xf32>
    %52 = arith.mulf %50, %51 : vector<8x8xf32>
    %53 = vector.extract_strided_slice %7 {offsets = [0, 16], sizes = [8, 8], strides = [1, 1]} : vector<8x32xf32> to vector<8x8xf32>
    %54 = vector.extract_strided_slice %8 {offsets = [0, 16], sizes = [8, 8], strides = [1, 1]} : vector<8x32xf32> to vector<8x8xf32>
    %cst_22 = arith.constant dense<0.000000e+00> : vector<8x8xf32>
    %55 = tpu.matmul %52, %53, %cst_22 {dimension_numbers = #tpu.dot_dimension_numbers<[1], [1], [0], [0], [0, 0, 1, 0], [], []>} : vector<8x8xf32>, vector<8x8xf32>, vector<8x8xf32> -> vector<8x8xf32>
    %cst_23 = arith.constant dense<0xFF800000> : vector<8xf32>
    %56 = vector.multi_reduction <maximumf>, %55, %cst_23 [1] : vector<8x8xf32> to vector<8xf32>
    %57 = vector.shape_cast %56 : vector<8xf32> to vector<8x1xf32>
    %58 = vector.broadcast %57 : vector<8x1xf32> to vector<8x8xf32>
    %59 = arith.subf %55, %58 : vector<8x8xf32>
    %60 = math.exp %59 : vector<8x8xf32>
    %cst_24 = arith.constant dense<0.000000e+00> : vector<8xf32>
    %61 = vector.multi_reduction <add>, %60, %cst_24 [1] : vector<8x8xf32> to vector<8xf32>
    %62 = vector.shape_cast %61 : vector<8xf32> to vector<8x1xf32>
    %63 = tpu.reciprocal %62 {approx = true} : vector<8x1xf32> -> vector<8x1xf32>
    %64 = vector.broadcast %63 : vector<8x1xf32> to vector<8x8xf32>
    %65 = arith.mulf %60, %64 : vector<8x8xf32>
    %cst_25 = arith.constant dense<0.000000e+00> : vector<8x8xf32>
    %66 = tpu.matmul %65, %54, %cst_25 {dimension_numbers = #tpu.dot_dimension_numbers<[1], [0], [0], [1], [0, 0, 1, 1], [], []>} : vector<8x8xf32>, vector<8x8xf32>, vector<8x8xf32> -> vector<8x8xf32>
    %67 = vector.extract_strided_slice %9 {offsets = [16, 0], sizes = [8, 128], strides = [1, 1]} : vector<32x128xf32> to vector<8x128xf32>
    %cst_26 = arith.constant dense<0.000000e+00> : vector<8x128xf32>
    %68 = tpu.matmul %66, %67, %cst_26 {dimension_numbers = #tpu.dot_dimension_numbers<[1], [0], [0], [1], [0, 0, 1, 1], [], []>} : vector<8x8xf32>, vector<8x128xf32>, vector<8x128xf32> -> vector<8x128xf32>
    %69 = arith.addf %49, %68 : vector<8x128xf32>
    %70 = vector.extract_strided_slice %6 {offsets = [0, 24], sizes = [8, 8], strides = [1, 1]} : vector<8x32xf32> to vector<8x8xf32>
    %cst_27 = arith.constant 0.353553385 : f32
    %71 = vector.broadcast %cst_27 : f32 to vector<8x8xf32>
    %72 = arith.mulf %70, %71 : vector<8x8xf32>
    %73 = vector.extract_strided_slice %7 {offsets = [0, 24], sizes = [8, 8], strides = [1, 1]} : vector<8x32xf32> to vector<8x8xf32>
    %74 = vector.extract_strided_slice %8 {offsets = [0, 24], sizes = [8, 8], strides = [1, 1]} : vector<8x32xf32> to vector<8x8xf32>
    %cst_28 = arith.constant dense<0.000000e+00> : vector<8x8xf32>
    %75 = tpu.matmul %72, %73, %cst_28 {dimension_numbers = #tpu.dot_dimension_numbers<[1], [1], [0], [0], [0, 0, 1, 0], [], []>} : vector<8x8xf32>, vector<8x8xf32>, vector<8x8xf32> -> vector<8x8xf32>
    %cst_29 = arith.constant dense<0xFF800000> : vector<8xf32>
    %76 = vector.multi_reduction <maximumf>, %75, %cst_29 [1] : vector<8x8xf32> to vector<8xf32>
    %77 = vector.shape_cast %76 : vector<8xf32> to vector<8x1xf32>
    %78 = vector.broadcast %77 : vector<8x1xf32> to vector<8x8xf32>
    %79 = arith.subf %75, %78 : vector<8x8xf32>
    %80 = math.exp %79 : vector<8x8xf32>
    %cst_30 = arith.constant dense<0.000000e+00> : vector<8xf32>
    %81 = vector.multi_reduction <add>, %80, %cst_30 [1] : vector<8x8xf32> to vector<8xf32>
    %82 = vector.shape_cast %81 : vector<8xf32> to vector<8x1xf32>
    %83 = tpu.reciprocal %82 {approx = true} : vector<8x1xf32> -> vector<8x1xf32>
    %84 = vector.broadcast %83 : vector<8x1xf32> to vector<8x8xf32>
    %85 = arith.mulf %80, %84 : vector<8x8xf32>
    %cst_31 = arith.constant dense<0.000000e+00> : vector<8x8xf32>
    %86 = tpu.matmul %85, %74, %cst_31 {dimension_numbers = #tpu.dot_dimension_numbers<[1], [0], [0], [1], [0, 0, 1, 1], [], []>} : vector<8x8xf32>, vector<8x8xf32>, vector<8x8xf32> -> vector<8x8xf32>
    %87 = vector.extract_strided_slice %9 {offsets = [24, 0], sizes = [8, 128], strides = [1, 1]} : vector<32x128xf32> to vector<8x128xf32>
    %cst_32 = arith.constant dense<0.000000e+00> : vector<8x128xf32>
    %88 = tpu.matmul %86, %87, %cst_32 {dimension_numbers = #tpu.dot_dimension_numbers<[1], [0], [0], [1], [0, 0, 1, 1], [], []>} : vector<8x8xf32>, vector<8x128xf32>, vector<8x128xf32> -> vector<8x128xf32>
    %89 = arith.addf %69, %88 : vector<8x128xf32>
    %90 = vector.broadcast %10 : vector<1x128xf32> to vector<8x128xf32>
    %91 = arith.addf %89, %90 : vector<8x128xf32>
    %c0_33 = arith.constant 0 : index
    %c0_34 = arith.constant 0 : index
    %92 = vector.load %arg5[%c0_33, %c0_34] : memref<8x128xf32, #tpu.memory_space<vmem>>, vector<8x128xf32>
    tpu.vector_store %arg5[%c0_33, %c0_34], %91 {strides = array<i32>} : memref<8x128xf32, #tpu.memory_space<vmem>>, vector<8x128xf32>,
    return
  }
}

</mosaic_0001>

<bundles_post_ra>
// kernel: tpu_custom_call.1
= control target key start
LH: loop header
LB: loop body
LE: loop exit
PB: predicated region body
PF: predicated region fallthrough
CT: control target
= control target key end

     0   :  { %10 = vsyncpa [#allocation3], 0  ;;  %s1511_s0 = inlined_call_operand.hbm [shape: f32[8,16], index: 0, kind: input, shape index: {}]   ;;  %s1512_s1 = inlined_call_operand.hbm [shape: f32[16,96], index: 1, kind: input, shape index: {}]   ;;  %s1513_s2 = inlined_call_operand.vmem [shape: f32[1,96], index: 2, kind: input, shape index: {}]   ;;  %s1514_s3 = inlined_call_operand.hbm [shape: f32[32,128], index: 3, kind: input, shape index: {}]   ;;  %s1515_s4 = inlined_call_operand.vmem [shape: f32[1,128], index: 4, kind: input, shape index: {}]   ;;  %s1516_s5 = inlined_call_operand.hbm [shape: f32[8,128], index: 5, kind: output, shape index: {}]  }
   0x1   :  { %11 = vsyncpa [#allocation6], 0 }
   0x2   :  { %12 = vsyncpa [#allocation4], 0  ;;  %s1363_s18 = smov [#allocation5]  }
   0x3   :  { %s28_s19 = sshll.u32 %s1363_s18, 4  ;;  %s29_s19 = int_to_ptr.vmem [resolvable:$true] %s28_s19 }
   0x4   :  { %s1285_s20 = scalar_lea.vmem %s29_s19, 256  ;;  %p1290_p1 = scmp.lt.s32.totalorder %s29_s19, %s29_s19 }
   0x5   :  { %p1286_p0 = scmp.ne.s32.totalorder %s29_s19, %s1285_s20  ;;  %p1291_p2 = scmp.lt.s32.totalorder %s1285_s20, %s1285_s20 }
   0x7   :  { %p1292_p3 = por %p1291_p2, %p1290_p1 }
   0x9   :  { %p1293_p4 = pnand %p1292_p3, %p1286_p0 }
   0xb   :  { %1296 = shalt.err (!%p1293_p4)
}
   0xc   :  { %s1364_s21 = smov 128   ;;  %s1365_s22 = smov 8  }
   0xd   :  { %34 = dma.hbm_to_vmem [thread:$0]  %s1512_s1, 256, %s29_s19, [#allocation6], %s1364_s21, %s1364_s21, %s1365_s22  }
   0xe   :  { %s1366_s25 = smov [#allocation2]   ;;  %s1367_s27 = smov [#allocation7]  }
   0xf   :  { %s19_s26 = sshll.u32 %s1366_s25, 4  ;;  %s42_s28 = sshll.u32 %s1367_s27, 4  ;;  %s20_s26 = int_to_ptr.vmem [resolvable:$true] %s19_s26  ;;  %s43_s28 = int_to_ptr.vmem [resolvable:$true] %s42_s28 }
  0x10   :  { %s1305_s29 = scalar_lea.vmem %s20_s26, 128  ;;  %p1310_p6 = scmp.lt.s32.totalorder %s20_s26, %s20_s26 }
  0x11   :  { %p1306_p5 = scmp.ne.s32.totalorder %s20_s26, %s1305_s29  ;;  %p1311_p7 = scmp.lt.s32.totalorder %s1305_s29, %s1305_s29 }
  0x13   :  { %p1312_p8 = por %p1311_p7, %p1310_p6 }
  0x15   :  { %p1313_p9 = pnand %p1312_p8, %p1306_p5 }
  0x17   :  { %1316 = shalt.err (!%p1313_p9)
}
  0x18   :  { %22 = dma.hbm_to_vmem [thread:$0]  %s1511_s0, 128, %s20_s26, [#allocation3]  }
  0x19   :  { %s1325_s7 = scalar_lea.vmem %s43_s28, 512  ;;  %p1330_p11 = scmp.lt.s32.totalorder %s43_s28, %s43_s28 }
  0x1a   :  { %p1326_p10 = scmp.ne.s32.totalorder %s43_s28, %s1325_s7  ;;  %p1331_p12 = scmp.lt.s32.totalorder %s1325_s7, %s1325_s7 }
  0x1c   :  { %p1332_p13 = por %p1331_p12, %p1330_p11 }
  0x1e   :  { %p1333_p0 = pnand %p1332_p13, %p1326_p10 }
  0x20   :  { %1336 = shalt.err (!%p1333_p0)
}
  0x21   :  { %48 = dma.hbm_to_vmem [thread:$0]  %s1514_s3, 512, %s43_s28, [#allocation6], %s1364_s21, %s1364_s21, %s1365_s22  }
  0x22   :  { %1357 = dma.done.wait [#allocation3], 128  }
  0x23   :  { %1358 = vsyncadd [#allocation3], 4294967168 }
  0x24   :  { %1359 = dma.done.wait [#allocation6], 768  }
  0x25   :  { %1360 = vsyncadd [#allocation6], 4294966528  ;;  %v1368_v0 = vmov 0.0   ;;  %vm1369_vm0 = vmmov 0   ;;  %v62_v1 = vld [vmem:[#allocation5 + $0x8] sm:$0xff]  ;;  %v61_v2 = vld [vmem:[#allocation5] sm:$0xff] }
  0x26   :  { %1175 = vmatprep.subr.mxu0 %v1368_v0  ;;  %1179 = vmatprep.mubr.msk.f32.mxu0 %vm1369_vm0, %v1368_v0  ;;  %v60_v3 = vld [vmem:[#allocation2] sm:$0xff]  ;;  %vm70_vm1 = vcmask 130048   ;;  %s1370_s9 = smov 96   ;;  %s1371_s10 = smov 120   ;;  %vm153_vm2 = vcmask 64512   ;;  %v144_v36 = vld [vmem:[#allocation7] sm:$0xff] }
  0x27   :  { %1182 = vmatprep.subr.mxu1 %v1368_v0  ;;  %1184 = vmatprep.mubr.msk.f32.mxu1 %vm1369_vm0, %v1368_v0  ;;  %v1129_v4 = vld [vmem:[%s1513_s2] ss:$0 sm:$0xff]  ;;  %s1372_s11 = smov 88   ;;  %s1373_s2 = smov 56   ;;  %v146_v63 = vld [vmem:[#allocation7 + $0x10] sm:$0xff] }
  0x28   :  { %1176 = vmatpush3.msra.mxu0 %v62_v1  ;;  %s1374_s12 = smov 64   ;;  %s1375_s13 = smov 80   ;;  %v145_v37 = vld [vmem:[#allocation7 + $0x8] sm:$0xff] }
  0x29   :  { %1177 = vmatprep.subr.mxu0 %v1368_v0  ;;  %s1376_s14 = smov 112   ;;  %s1377_s15 = smov 72  }
  0x2a   :  { %1178 = vmatpush3.msra.mxu0 %v61_v2  ;;  %s1378_s16 = smov 104   ;;  %s1379_s17 = smov 48  }
  0x2b   :  { %1180 = vmatmul.mubr.msk.f32.vlgmr.msra.gmra.mxu0 %vm70_vm1, %v60_v3  ;;  %1187 = vmatprep.subr.mxu0 %v1368_v0  ;;  %s1380_s18 = smov 40   ;;  %s1381_s21 = smov [#allocation8]  }
  0x2c   :  { %1189 = vmatprep.mubr.msk.f32.mxu0 %vm1369_vm0, %v1368_v0  ;;  %s1119_s22 = sshll.u32 %s1381_s21, 4  ;;  %s1120_s22 = int_to_ptr.vmem [resolvable:$true] %s1119_s22 }
  0x2d   :  { %s1337_s23 = scalar_lea.vmem %s1120_s22, 128  ;;  %p1342_p2 = scmp.lt.s32.totalorder %s1120_s22, %s1120_s22 }
  0x2e   :  { %p1338_p1 = scmp.ne.s32.totalorder %s1120_s22, %s1337_s23  ;;  %p1343_p3 = scmp.lt.s32.totalorder %s1337_s23, %s1337_s23 }
  0x30   :  { %p1344_p4 = por %p1343_p3, %p1342_p2 }
  0x32   :  { %p1345_p5 = pnand %p1344_p4, %p1338_p1 }
  0xeb   :  { %v140_v5 = vpop.f32.mrf.mxu0 }
  0xec   :  { %v1434_v6 = vadd.f32 %v1129_v4, %v140_v5 }
  0xed   :  { %v1181_v7 = vpop.f32.mrf.mxu0 }
  0xee   :  { %151 = vrot.lane.b32.xlu0 %v1434_v6, %s1370_s9  ;;  %v1438_v8 = vmul.f32 0.35355338, %v1434_v6 }
  0xf0   :  { %316 = vrot.lane.b32.xlu1 %v1438_v8, %s1371_s10 }
  0xf2   :  { %318 = vrot.lane.b32.xlu0 %v1434_v6, %s1372_s11 }
 0x160   :  { %v152_v9 = vpop.permute.xlu0 %151 }
 0x161   :  { %1183 = vmatpush3.xpose.msk.msra.mxu1 %vm153_vm2, %v152_v9 }
 0x162   :  { %1192 = vmatprep.subr.mxu1 %v1368_v0  ;;  %v317_v11 = vpop.permute.xlu1 %316 }
 0x164   :  { %v319_v10 = vpop.permute.xlu0 %318  ;;  %1185 = vmatmul.mubr.msk.f32.vlgmr.msra.gmra.mxu1 %vm153_vm2, %v1438_v8 }
 0x165   :  { %1193 = vmatpush3.xpose.msk.msra.mxu1 %vm153_vm2, %v319_v10  ;;  %1194 = vmatprep.mubr.msk.f32.mxu1 %vm1369_vm0, %v1368_v0 }
 0x166   :  { %1202 = vmatprep.subr.mxu1 %v1368_v0 }
 0x168   :  { %1195 = vmatmul.mubr.msk.f32.vlgmr.msra.gmra.mxu1 %vm153_vm2, %v317_v11 }
 0x169   :  { %1204 = vmatprep.mubr.msk.f32.mxu1 %vm1369_vm0, %v1368_v0  ;;  %1203 = vmatpush3.msra.mxu1 %v145_v37 }
 0x16a   :  { %1212 = vmatprep.subr.mxu1 %v1368_v0 }
 0x224   :  { %v225_v12 = vpop.f32.mrf.mxu1 }
 0x225   :  { %v229_v13 = vsel %vm153_vm2, %v225_v12, -inf }
 0x226   :  { %230 = vmax.xlane.f32.xlu1 %v229_v13  ;;  %v1186_v14 = vpop.f32.mrf.mxu1  ;;  %v147_v13 = vld [vmem:[#allocation7 + $0x18] sm:$0xff] }
 0x228   :  { %v390_v15 = vpop.f32.mrf.mxu1 }
 0x229   :  { %v394_v16 = vsel %vm153_vm2, %v390_v15, -inf }
 0x22a   :  { %395 = vmax.xlane.f32.xlu0 %v394_v16  ;;  %v1196_v17 = vpop.f32.mrf.mxu1 }
 0x2af   :  { %v231_v18 = vpop.xlane.xlu1 %230 }
 0x2b0   :  { %v232_v19 = vsub.f32 %v225_v12, %v231_v18 }
 0x2b2   :  { %v233_v20 = vmul.f32 1.442695, %v232_v19 }
 0x2b3   :  { %v396_v21 = vpop.xlane.xlu0 %395 }
 0x2b4   :  { %1261 = vpow2.f32 %v233_v20  ;;  %v397_v22 = vsub.f32 %v390_v15, %v396_v21  ;;  %v1147_v20 = vld [vmem:[%s1515_s4] ss:$0 sm:$0xff] }
 0x2b6   :  { %v398_v23 = vmul.f32 1.442695, %v397_v22 }
 0x2b8   :  { %1263 = vpow2.f32 %v398_v23 }
 0x2c1   :  { %v1262_v24 = vpop.eup %1261 }
 0x2c2   :  { %v235_v25 = vsel %vm153_vm2, %v1262_v24, 0.0 }
 0x2c3   :  { %236 = vadd.xlane.f32.xlu0 %v235_v25 }
 0x2c5   :  { %v1264_v26 = vpop.eup %1263 }
 0x2c6   :  { %v400_v27 = vsel %vm153_vm2, %v1264_v26, 0.0 }
 0x2c7   :  { %401 = vadd.xlane.f32.xlu1 %v400_v27 }
 0x2d8   :  { %405 = vrot.lane.b32.xlu1 %v1434_v6, %s1373_s2 }
 0x2d9   :  { %240 = vrot.lane.b32.xlu0 %v1434_v6, %s1374_s12 }
 0x2dc   :  { %629 = vrot.lane.b32.xlu1 %v1434_v6, %s1375_s13 }
 0x2dd   :  { %627 = vrot.lane.b32.xlu0 %v1438_v8, %s1376_s14 }
 0x34c   :  { %v237_v28 = vpop.xlane.xlu0 %236 }
 0x34d   :  { %1265 = vrcp.f32 %v237_v28 }
 0x350   :  { %v402_v29 = vpop.xlane.xlu1 %401  ;;  %v241_v30 = vpop.permute.xlu0 %240 }
 0x351   :  { %1267 = vrcp.f32 %v402_v29  ;;  %1188 = vmatpush3.msra.mxu0 %v241_v30 }
 0x352   :  { %1197 = vmatprep.subr.mxu0 %v1368_v0 }
 0x354   :  { %v406_v33 = vpop.permute.xlu1 %405  ;;  %v628_v43 = vpop.permute.xlu0 %627 }
 0x358   :  { %v630_v41 = vpop.permute.xlu1 %629 }
 0x35a   :  { %v1266_v31 = vpop.eup %1265 }
 0x35b   :  { %v239_v32 = vmul.f32 %v1266_v31, %v1262_v24 }
 0x35d   :  { %1190 = vmatmul.mubr.msk.f32.vlgmr.msra.gmra.mxu0 %vm153_vm2, %v239_v32 }
 0x35e   :  { %v1268_v34 = vpop.eup %1267  ;;  %1198 = vmatpush3.msra.mxu0 %v406_v33  ;;  %1199 = vmatprep.mubr.msk.f32.mxu0 %vm1369_vm0, %v1368_v0 }
 0x35f   :  { %v404_v35 = vmul.f32 %v1268_v34, %v1264_v26  ;;  %1207 = vmatprep.subr.mxu0 %v1368_v0 }
 0x361   :  { %1200 = vmatmul.mubr.msk.f32.vlgmr.msra.gmra.mxu0 %vm153_vm2, %v404_v35 }
 0x362   :  { %1209 = vmatprep.mubr.msk.f32.mxu0 %vm1369_vm0, %v1368_v0  ;;  %1208 = vmatpush3.msra.mxu0 %v144_v36 }
 0x363   :  { %1217 = vmatprep.subr.mxu0 %v1368_v0 }
 0x41d   :  { %v312_v38 = vpop.f32.mrf.mxu0 }
 0x41e   :  { %1210 = vmatmul.mubr.msk.f32.vlgmr.msra.gmra.mxu0 %vm153_vm2, %v312_v38 }
 0x41f   :  { %v1191_v39 = vpop.f32.mrf.mxu0  ;;  %1219 = vmatprep.mubr.msk.f32.mxu0 %vm1369_vm0, %v1368_v0 }
 0x421   :  { %v477_v40 = vpop.f32.mrf.mxu0 }
 0x422   :  { %1205 = vmatmul.mubr.msk.f32.vlgmr.msra.gmra.mxu1 %vm153_vm2, %v477_v40 }
 0x423   :  { %1213 = vmatpush3.xpose.msk.msra.mxu1 %vm153_vm2, %v630_v41  ;;  %v1201_v42 = vpop.f32.mrf.mxu0  ;;  %1214 = vmatprep.mubr.msk.f32.mxu1 %vm1369_vm0, %v1368_v0 }
 0x424   :  { %1222 = vmatprep.subr.mxu1 %v1368_v0 }
 0x426   :  { %1215 = vmatmul.mubr.msk.f32.vlgmr.msra.gmra.mxu1 %vm153_vm2, %v628_v43 }
 0x427   :  { %1224 = vmatprep.mubr.msk.f32.mxu1 %vm1369_vm0, %v1368_v0  ;;  %1223 = vmatpush3.msra.mxu1 %v146_v63 }
 0x428   :  { %1232 = vmatprep.subr.mxu1 %v1368_v0 }
 0x4de   :  { %v623_v44 = vpop.f32.mrf.mxu0 }
 0x4e0   :  { %v1211_v45 = vpop.f32.mrf.mxu0 }
 0x4e2   :  { %v550_v46 = vpop.f32.mrf.mxu1 }
 0x4e3   :  { %v624_v47 = vadd.f32 %v623_v44, %v550_v46 }
 0x4e4   :  { %v1206_v48 = vpop.f32.mrf.mxu1 }
 0x4e6   :  { %v701_v49 = vpop.f32.mrf.mxu1 }
 0x4e7   :  { %v705_v50 = vsel %vm153_vm2, %v701_v49, -inf }
 0x4e8   :  { %706 = vmax.xlane.f32.xlu1 %v705_v50  ;;  %v1216_v51 = vpop.f32.mrf.mxu1 }
 0x4f9   :  { %868 = vrot.lane.b32.xlu1 %v1434_v6, %s1377_s15 }
 0x4fd   :  { %866 = vrot.lane.b32.xlu1 %v1438_v8, %s1378_s16 }
 0x571   :  { %v707_v52 = vpop.xlane.xlu1 %706 }
 0x572   :  { %v708_v53 = vsub.f32 %v701_v49, %v707_v52 }
 0x574   :  { %v709_v54 = vmul.f32 1.442695, %v708_v53 }
 0x575   :  { %v869_v60 = vpop.permute.xlu1 %868 }
 0x576   :  { %1269 = vpow2.f32 %v709_v54 }
 0x579   :  { %v867_v62 = vpop.permute.xlu1 %866 }
 0x583   :  { %v1270_v55 = vpop.eup %1269 }
 0x584   :  { %v711_v56 = vsel %vm153_vm2, %v1270_v55, 0.0 }
 0x585   :  { %712 = vadd.xlane.f32.xlu0 %v711_v56 }
 0x59b   :  { %716 = vrot.lane.b32.xlu0 %v1434_v6, %s1379_s17 }
 0x60e   :  { %v713_v57 = vpop.xlane.xlu0 %712 }
 0x60f   :  { %1271 = vrcp.f32 %v713_v57 }
 0x612   :  { %v717_v58 = vpop.permute.xlu0 %716 }
 0x613   :  { %1218 = vmatpush3.msra.mxu0 %v717_v58 }
 0x614   :  { %1227 = vmatprep.subr.mxu0 %v1368_v0 }
 0x61c   :  { %v1272_v59 = vpop.eup %1271 }
 0x61d   :  { %v715_v61 = vmul.f32 %v1272_v59, %v1270_v55 }
 0x61f   :  { %1220 = vmatmul.mubr.msk.f32.vlgmr.msra.gmra.mxu0 %vm153_vm2, %v715_v61 }
 0x620   :  { %1228 = vmatpush3.xpose.msk.msra.mxu0 %vm153_vm2, %v869_v60  ;;  %1229 = vmatprep.mubr.msk.f32.mxu0 %vm1369_vm0, %v1368_v0 }
 0x621   :  { %1237 = vmatprep.subr.mxu0 %v1368_v0 }
 0x623   :  { %1230 = vmatmul.mubr.msk.f32.vlgmr.msra.gmra.mxu0 %vm153_vm2, %v867_v62 }
 0x624   :  { %1239 = vmatprep.mubr.msk.f32.mxu0 %vm1369_vm0, %v1368_v0  ;;  %1238 = vmatpush3.msra.mxu0 %v147_v13 }
 0x6df   :  { %v788_v1 = vpop.f32.mrf.mxu0 }
 0x6e0   :  { %1225 = vmatmul.mubr.msk.f32.vlgmr.msra.gmra.mxu1 %vm153_vm2, %v788_v1 }
 0x6e1   :  { %v1221_v2 = vpop.f32.mrf.mxu0  ;;  %1234 = vmatprep.mubr.msk.f32.mxu1 %vm1369_vm0, %v1368_v0 }
 0x6e3   :  { %v940_v3 = vpop.f32.mrf.mxu0 }
 0x6e4   :  { %v944_v4 = vsel %vm153_vm2, %v940_v3, -inf }
 0x6e5   :  { %945 = vmax.xlane.f32.xlu0 %v944_v4  ;;  %v1231_v5 = vpop.f32.mrf.mxu0 }
 0x6fb   :  { %955 = vrot.lane.b32.xlu0 %v1434_v6, %s1380_s18 }
 0x76e   :  { %v946_v7 = vpop.xlane.xlu0 %945 }
 0x76f   :  { %v947_v8 = vsub.f32 %v940_v3, %v946_v7 }
 0x771   :  { %v948_v9 = vmul.f32 1.442695, %v947_v8 }
 0x772   :  { %v956_v10 = vpop.permute.xlu0 %955 }
 0x773   :  { %1273 = vpow2.f32 %v948_v9  ;;  %1233 = vmatpush3.msra.mxu1 %v956_v10 }
 0x780   :  { %v1274_v11 = vpop.eup %1273 }
 0x781   :  { %v950_v12 = vsel %vm153_vm2, %v1274_v11, 0.0 }
 0x782   :  { %951 = vadd.xlane.f32.xlu1 %v950_v12 }
 0x7a0   :  { %v861_v0 = vpop.f32.mrf.mxu1 }
 0x7a1   :  { %v865_v14 = vadd.f32 %v861_v0, %v624_v47 }
 0x7a2   :  { %v1226_v15 = vpop.f32.mrf.mxu1 }
 0x80b   :  { %v952_v16 = vpop.xlane.xlu1 %951 }
 0x80c   :  { %1275 = vrcp.f32 %v952_v16 }
 0x819   :  { %v1276_v17 = vpop.eup %1275 }
 0x81a   :  { %v954_v18 = vmul.f32 %v1276_v17, %v1274_v11 }
 0x81c   :  { %1235 = vmatmul.mubr.msk.f32.vlgmr.msra.gmra.mxu1 %vm153_vm2, %v954_v18 }
 0x8dc   :  { %v1027_v6 = vpop.f32.mrf.mxu1 }
 0x8dd   :  { %1240 = vmatmul.mubr.msk.f32.vlgmr.msra.gmra.mxu0 %vm153_vm2, %v1027_v6 }
 0x8de   :  { %v1236_v19 = vpop.f32.mrf.mxu1 }
 0x99d   :  { %v1100_v21 = vpop.f32.mrf.mxu0 }
 0x99e   :  { %v1104_v22 = vadd.f32 %v1100_v21, %v865_v14 }
 0x99f   :  { %v1241_v23 = vpop.f32.mrf.mxu0 }
 0x9a0   :  { %v1111_v24 = vadd.f32 %v1147_v20, %v1104_v22 }
 0x9a2   :  { %1112 = vst [vmem:[#allocation8] sm:$0xff] %v1111_v24 }
 0x9a3   :  { %1348 = shalt.err (!%p1345_p5)
}
 0x9a4   :  { %1122 = dma.vmem_to_hbm [thread:$0]  %s1120_s22, 128, %s1516_s5, [#allocation4]  }
 0x9a5   :  { %1361 = dma.done.wait [#allocation4], 128  }
 0x9a6   :  { %1362 = vsyncadd [#allocation4], 4294967168 }
 0x9a7   :  { %1126 = vsyncpa [#allocation3], 1 }
 0x9a8   :  { %1127 = vsyncpa [#allocation6], 1 }
 0x9a9   :  { %1128 = vsyncpa [#allocation4], 1 }

</bundles_post_ra>
